<compile_context>
chip_gen: v5e
topology: v5e:2x2
jax: 0.10.0
libtpu: 0.0.40
codegen_flags: <defaults>
</compile_context>

<pallas_src>
import jax
import jax.numpy as jnp
from jax import lax
from jax.experimental import pallas as pl
from jax.experimental.pallas import tpu as pltpu
import numpy as np

_LANE = 128
_SUBLANE = 8


def _round_up(x, m):
    return ((x + m - 1) // m) * m


def _model_kernel(tok_ref, fused_ref, b_ref, out_ref):
    """out = (counts / S) @ (E @ W^T)_padded + bias.

    counts are accumulated with an unrolled loop over S: each step is one
    (Bblk, Vp) lane-aligned VALU compare + add, keeping Bblk on sublanes the
    whole time (no 3-D one-hot, no XLU reduce before the MXU LHS)."""
    tok = tok_ref[...]                                    # (Bblk, S) int32
    Bblk, S = tok.shape
    Vp = fused_ref.shape[0]

    iota_v = lax.broadcasted_iota(jnp.int32, (Bblk, Vp), 1)   # hoisted, reused S times
    counts = jnp.zeros((Bblk, Vp), jnp.float32)
    for s in range(S):                                    # S is small & static -> unrolled
        counts = counts + (tok[:, s:s + 1] == iota_v).astype(jnp.float32)
    counts = counts * (1.0 / S)                           # fold the mean pre-MXU

    out_ref[...] = (
        jnp.dot(counts.astype(fused_ref.dtype), fused_ref[...],
                preferred_element_type=jnp.float32)
        + b_ref[...]
    )


def fuse_params(emb, w, b, *, weight_dtype=jnp.float32):
    """Precompute E @ W^T and the lane-padded weight/bias ONCE per weight set.

    Hoisting this out of the per-call path removes an XLA matmul + two pad
    kernels (+HBM round trips) from every forward. `weight_dtype=jnp.bfloat16`
    is an optional v6e/v7x MXU speedup (re-validate tolerances if used)."""
    V, D = emb.shape
    O = w.shape[0]
    fused = jnp.dot(emb.astype(jnp.float32), w.astype(jnp.float32).T)   # (V, O)
    V_pad = _round_up(V, _LANE)
    O_pad = _round_up(O, _LANE)
    fused_p = jnp.zeros((V_pad, O_pad), weight_dtype).at[:V, :O].set(
        fused.astype(weight_dtype))
    b_p = jnp.zeros((1, O_pad), jnp.float32).at[0, :O].set(b.astype(jnp.float32))
    return fused_p, b_p, O


def _pick_block_b(B):
    """Generation-aware batch tile.

    v7x has 2 TensorCores -> split the 'parallel' batch grid into >= 2 steps
    when the batch allows it. v5e/v6e are single-TC (grid is a serial loop) ->
    maximize the block / minimize grid steps (per-step overhead ~0.35us)."""
    B_pad = _round_up(max(B, 1), _SUBLANE)
    try:
        kind = jax.devices()[0].device_kind.lower()
    except Exception:  # pragma: no cover - defensive
        kind = ""
    if "v7" in kind and B_pad >= 2 * _SUBLANE:
        block_b = _round_up(pl.cdiv(B_pad, 2), _SUBLANE)   # n_b >= 2: both cores busy
    else:
        block_b = min(B_pad, 512)                          # single TC: one big step
    return block_b


def _pallas_forward(tokens, fused_p, b_p, o_dim, block_b=None):
    B, S = tokens.shape
    V_pad, O_pad = fused_p.shape

    if block_b is None:
        block_b = _pick_block_b(B)
    n_b = pl.cdiv(max(B, 1), block_b)
    B_pad = n_b * block_b

    # Padded batch rows carry token id 0 -> they produce real logits in the
    # padded region; always strip with the final [:B] slice.
    tok_p = jnp.zeros((B_pad, S), jnp.int32).at[:B].set(tokens.astype(jnp.int32))

    out = pl.pallas_call(
        _model_kernel,
        out_shape=jax.ShapeDtypeStruct((B_pad, O_pad), jnp.float32),
        grid_spec=pltpu.PrefetchScalarGridSpec(
            num_scalar_prefetch=0,
            grid=(n_b,),
            in_specs=[
                pl.BlockSpec((block_b, S), lambda i: (i, 0)),       # token stream
                pl.BlockSpec((V_pad, O_pad), lambda i: (0, 0)),     # fused W, resident
                pl.BlockSpec((1, O_pad), lambda i: (0, 0)),         # bias, resident
            ],
            out_specs=pl.BlockSpec((block_b, O_pad), lambda i: (i, 0)),
        ),
        compiler_params=pltpu.CompilerParams(
            dimension_semantics=("parallel",)),
    )(tok_p, fused_p, b_p)

    return out[:B, :o_dim]                                 # strip batch/lane padding


def make_torch_model(emb, w, b, *, block_b=None, weight_dtype=jnp.float32):
    """Build a jitted forward fn; weight fusion + padding is done once here."""
    fused_p, b_p, o_dim = fuse_params(emb, w, b, weight_dtype=weight_dtype)

    @jax.jit
    def forward(tokens):
        return _pallas_forward(tokens, fused_p, b_p, o_dim, block_b)

    return forward


def torch_model_forward(tokens, emb, w, b):
    """One-shot convenience (re-fuses weights each call); prefer make_torch_model
    when weights are static across calls."""
    fused_p, b_p, o_dim = fuse_params(emb, w, b)
    return _pallas_forward(tokens, fused_p, b_p, o_dim)


def torch_model_loss(tokens, y, emb, w, b):
    """Equivalent of TorchModel.forward(x, y) -> cross-entropy loss (glue in JAX)."""
    logits = torch_model_forward(tokens, emb, w, b)
    logp = jax.nn.log_softmax(logits, axis=-1)
    return -jnp.mean(jnp.take_along_axis(logp, y[:, None], axis=-1)[:, 0])


def _reference_forward(tokens, emb, w, b):
    # pure-JAX reference mirroring the PyTorch semantics
    e = emb[tokens]                  # (B, S, D) embedding gather
    pooled = jnp.mean(e, axis=1)     # AvgPool1d over sentence_length
    return pooled @ w.T + b          # (B, S + 1)


if __name__ == "__main__":
    # Small shapes consistent with the module
    vector_dim = 32          # D
    sentence_length = 8      # S
    vocab_size = 30          # len(vocab) = V
    batch = 2                # B
    num_classes = sentence_length + 1  # O

    key = jax.random.PRNGKey(0)
    k_tok, k_emb, k_w, k_b, k_y = jax.random.split(key, 5)

    tokens = jax.random.randint(k_tok, (batch, sentence_length), 0, vocab_size,
                                dtype=jnp.int32)
    emb = jax.random.normal(k_emb, (vocab_size, vector_dim), dtype=jnp.float32)
    w = jax.random.normal(k_w, (num_classes, vector_dim), dtype=jnp.float32) * 0.1
    b = jax.random.normal(k_b, (num_classes,), dtype=jnp.float32) * 0.1
    y = jax.random.randint(k_y, (batch,), 0, num_classes, dtype=jnp.int32)

    # Preferred path: fuse/pad weights once, jitted forward.
    forward = make_torch_model(emb, w, b)
    logits = forward(tokens)
    jax.block_until_ready(logits)

    ref = _reference_forward(tokens, emb, w, b)
    np.testing.assert_allclose(np.asarray(logits), np.asarray(ref),
                               rtol=1e-3, atol=1e-3)

    # One-shot convenience path + loss glue.
    logits2 = torch_model_forward(tokens, emb, w, b)
    np.testing.assert_allclose(np.asarray(logits2), np.asarray(ref),
                               rtol=1e-3, atol=1e-3)
    loss = torch_model_loss(tokens, y, emb, w, b)
    jax.block_until_ready(loss)

    print("KERNEL_OK")
</pallas_src>

<mosaic_0001>
module attributes {stable_mosaic.version = 11 : i64} {
  func.func @_model_kernel(%arg0: i32, %arg1: memref<8x8xi32, #tpu.memory_space<vmem>>, %arg2: memref<128x128xf32, #tpu.memory_space<vmem>>, %arg3: memref<1x128xf32, #tpu.memory_space<vmem>>, %arg4: memref<8x128xf32, #tpu.memory_space<vmem>>) attributes {dimension_semantics = [#tpu.dimension_semantics<parallel>], iteration_bounds = array<i64: 1>, scalar_prefetch = 0 : i64, scratch_operands = 0 : i64, tpu.core_type = #tpu.core_type<tc>, window_params = [{transform_indices = @transform_0, window_bounds = array<i64: 8, 8>}, {pipeline_mode = #tpu.pipeline_mode<synchronous>, transform_indices = @transform_1, window_bounds = array<i64: 128, 128>}, {pipeline_mode = #tpu.pipeline_mode<synchronous>, transform_indices = @transform_2, window_bounds = array<i64: 1, 128>}, {transform_indices = @transform_3, window_bounds = array<i64: 8, 128>}]} {
    %c0 = arith.constant 0 : index
    %c0_0 = arith.constant 0 : index
    %0 = vector.load %arg1[%c0, %c0_0] : memref<8x8xi32, #tpu.memory_space<vmem>>, vector<8x8xi32>
    %1 = tpu.iota {dimensions = array<i32: 1>} : vector<8x128xi32>
    %cst = arith.constant 0.000000e+00 : f32
    %2 = vector.broadcast %cst : f32 to vector<8x128xf32>
    %3 = vector.extract_strided_slice %0 {offsets = [0, 0], sizes = [8, 1], strides = [1, 1]} : vector<8x8xi32> to vector<8x1xi32>
    %4 = vector.broadcast %3 : vector<8x1xi32> to vector<8x128xi32>
    %5 = arith.cmpi eq, %4, %1 : vector<8x128xi32>
    %6 = arith.extui %5 : vector<8x128xi1> to vector<8x128xi32>
    %7 = arith.sitofp %6 : vector<8x128xi32> to vector<8x128xf32>
    %8 = arith.addf %2, %7 : vector<8x128xf32>
    %9 = vector.extract_strided_slice %0 {offsets = [0, 1], sizes = [8, 1], strides = [1, 1]} : vector<8x8xi32> to vector<8x1xi32>
    %10 = vector.broadcast %9 : vector<8x1xi32> to vector<8x128xi32>
    %11 = arith.cmpi eq, %10, %1 : vector<8x128xi32>
    %12 = arith.extui %11 : vector<8x128xi1> to vector<8x128xi32>
    %13 = arith.sitofp %12 : vector<8x128xi32> to vector<8x128xf32>
    %14 = arith.addf %8, %13 : vector<8x128xf32>
    %15 = vector.extract_strided_slice %0 {offsets = [0, 2], sizes = [8, 1], strides = [1, 1]} : vector<8x8xi32> to vector<8x1xi32>
    %16 = vector.broadcast %15 : vector<8x1xi32> to vector<8x128xi32>
    %17 = arith.cmpi eq, %16, %1 : vector<8x128xi32>
    %18 = arith.extui %17 : vector<8x128xi1> to vector<8x128xi32>
    %19 = arith.sitofp %18 : vector<8x128xi32> to vector<8x128xf32>
    %20 = arith.addf %14, %19 : vector<8x128xf32>
    %21 = vector.extract_strided_slice %0 {offsets = [0, 3], sizes = [8, 1], strides = [1, 1]} : vector<8x8xi32> to vector<8x1xi32>
    %22 = vector.broadcast %21 : vector<8x1xi32> to vector<8x128xi32>
    %23 = arith.cmpi eq, %22, %1 : vector<8x128xi32>
    %24 = arith.extui %23 : vector<8x128xi1> to vector<8x128xi32>
    %25 = arith.sitofp %24 : vector<8x128xi32> to vector<8x128xf32>
    %26 = arith.addf %20, %25 : vector<8x128xf32>
    %27 = vector.extract_strided_slice %0 {offsets = [0, 4], sizes = [8, 1], strides = [1, 1]} : vector<8x8xi32> to vector<8x1xi32>
    %28 = vector.broadcast %27 : vector<8x1xi32> to vector<8x128xi32>
    %29 = arith.cmpi eq, %28, %1 : vector<8x128xi32>
    %30 = arith.extui %29 : vector<8x128xi1> to vector<8x128xi32>
    %31 = arith.sitofp %30 : vector<8x128xi32> to vector<8x128xf32>
    %32 = arith.addf %26, %31 : vector<8x128xf32>
    %33 = vector.extract_strided_slice %0 {offsets = [0, 5], sizes = [8, 1], strides = [1, 1]} : vector<8x8xi32> to vector<8x1xi32>
    %34 = vector.broadcast %33 : vector<8x1xi32> to vector<8x128xi32>
    %35 = arith.cmpi eq, %34, %1 : vector<8x128xi32>
    %36 = arith.extui %35 : vector<8x128xi1> to vector<8x128xi32>
    %37 = arith.sitofp %36 : vector<8x128xi32> to vector<8x128xf32>
    %38 = arith.addf %32, %37 : vector<8x128xf32>
    %39 = vector.extract_strided_slice %0 {offsets = [0, 6], sizes = [8, 1], strides = [1, 1]} : vector<8x8xi32> to vector<8x1xi32>
    %40 = vector.broadcast %39 : vector<8x1xi32> to vector<8x128xi32>
    %41 = arith.cmpi eq, %40, %1 : vector<8x128xi32>
    %42 = arith.extui %41 : vector<8x128xi1> to vector<8x128xi32>
    %43 = arith.sitofp %42 : vector<8x128xi32> to vector<8x128xf32>
    %44 = arith.addf %38, %43 : vector<8x128xf32>
    %45 = vector.extract_strided_slice %0 {offsets = [0, 7], sizes = [8, 1], strides = [1, 1]} : vector<8x8xi32> to vector<8x1xi32>
    %46 = vector.broadcast %45 : vector<8x1xi32> to vector<8x128xi32>
    %47 = arith.cmpi eq, %46, %1 : vector<8x128xi32>
    %48 = arith.extui %47 : vector<8x128xi1> to vector<8x128xi32>
    %49 = arith.sitofp %48 : vector<8x128xi32> to vector<8x128xf32>
    %50 = arith.addf %44, %49 : vector<8x128xf32>
    %cst_1 = arith.constant 1.250000e-01 : f32
    %51 = vector.broadcast %cst_1 : f32 to vector<8x128xf32>
    %52 = arith.mulf %50, %51 : vector<8x128xf32>
    %c0_2 = arith.constant 0 : index
    %c0_3 = arith.constant 0 : index
    %53 = vector.load %arg2[%c0_2, %c0_3] : memref<128x128xf32, #tpu.memory_space<vmem>>, vector<128x128xf32>
    %cst_4 = arith.constant dense<0.000000e+00> : vector<8x128xf32>
    %54 = tpu.matmul %52, %53, %cst_4 {dimension_numbers = #tpu.dot_dimension_numbers<[1], [0], [0], [1], [0, 0, 1, 1], [], []>} : vector<8x128xf32>, vector<128x128xf32>, vector<8x128xf32> -> vector<8x128xf32>
    %c0_5 = arith.constant 0 : index
    %c0_6 = arith.constant 0 : index
    %55 = vector.load %arg3[%c0_5, %c0_6] : memref<1x128xf32, #tpu.memory_space<vmem>>, vector<1x128xf32>
    %56 = vector.broadcast %55 : vector<1x128xf32> to vector<8x128xf32>
    %57 = arith.addf %54, %56 : vector<8x128xf32>
    %c0_7 = arith.constant 0 : index
    %c0_8 = arith.constant 0 : index
    %58 = vector.load %arg4[%c0_7, %c0_8] : memref<8x128xf32, #tpu.memory_space<vmem>>, vector<8x128xf32>
    tpu.vector_store %arg4[%c0_7, %c0_8], %57 {strides = array<i32>} : memref<8x128xf32, #tpu.memory_space<vmem>>, vector<8x128xf32>,
    return
  }
  func.func @transform_0(%arg0: i32) -> (i32, i32) {
    %c0_i32 = arith.constant 0 : i32
    %c0_i32_0 = arith.constant 0 : i32
    return %arg0, %c0_i32 : i32, i32
  }
  func.func @transform_1(%arg0: i32) -> (i32, i32) {
    %c0_i32 = arith.constant 0 : i32
    %c0_i32_0 = arith.constant 0 : i32
    %c0_i32_1 = arith.constant 0 : i32
    return %c0_i32, %c0_i32_0 : i32, i32
  }
  func.func @transform_2(%arg0: i32) -> (i32, i32) {
    %c0_i32 = arith.constant 0 : i32
    %c0_i32_0 = arith.constant 0 : i32
    %c0_i32_1 = arith.constant 0 : i32
    return %c0_i32, %c0_i32_0 : i32, i32
  }
  func.func @transform_3(%arg0: i32) -> (i32, i32) {
    %c0_i32 = arith.constant 0 : i32
    %c0_i32_0 = arith.constant 0 : i32
    return %arg0, %c0_i32 : i32, i32
  }
}

</mosaic_0001>

<bundles_post_ra>
// kernel: forward.1
= control target key start
LH: loop header
LB: loop body
LE: loop exit
PB: predicated region body
PF: predicated region fallthrough
CT: control target
= control target key end

     0   :  { %8 = vsyncpa [#allocation3], 0  ;;  %s192_s15 = smov [#allocation2]   ;;  %s193_s17 = smov 128   ;;  %s236_s0 = inlined_call_operand.vmem [shape: s32[8,8], index: 0, kind: input, shape index: {}]   ;;  %s237_s1 = inlined_call_operand.hbm [shape: f32[128,128], index: 1, kind: input, shape index: {}]   ;;  %s238_s2 = inlined_call_operand.vmem [shape: f32[1,128], index: 2, kind: input, shape index: {}]   ;;  %s239_s3 = inlined_call_operand.vmem [shape: f32[8,128], index: 3, kind: output, shape index: {}]  }
   0x1   :  { %s15_s14 = sshll.u32 %s237_s1, 4  ;;  %s17_s16 = sshll.u32 %s192_s15, 4  ;;  %s16_s14 = int_to_ptr.hbm [resolvable:$true] %s15_s14  ;;  %s18_s16 = int_to_ptr.vmem [resolvable:$true] %s17_s16 }
   0x2   :  { %s194_s18 = smov 8  }
   0x3   :  { %23 = dma.hbm_to_vmem [thread:$0]  %s16_s14, 2048, %s18_s16, [#allocation3], %s193_s17, %s193_s17, %s194_s18  }
   0x4   :  { %190 = dma.done.wait [#allocation3], 2048  }
   0x5   :  { %191 = vsyncadd [#allocation3], 4294965248  ;;  %v195_v0 = vmov 0   ;;  %v196_v1 = vmov 2   ;;  %v197_v2 = vmov 4   ;;  %v30_v3 = vld [vmem:[%s236_s0] sm:$0xff]  ;;  %v31_v26 = vlaneseq }
   0x6   :  { %156 = vset.pattern.permute.xlu0 %v195_v0  ;;  %158 = vset.pattern.permute.xlu1 %v196_v1  ;;  %v105_v4 = vld [vmem:[#allocation2 + $0x78] sm:$0xff]  ;;  %v104_v5 = vld [vmem:[#allocation2 + $0x70] sm:$0xff]  ;;  %v198_v6 = vmov 1   ;;  %v199_v7 = vmov 3   ;;  %v200_v8 = vmov 5   ;;  %v201_v9 = vmov 6  }
   0x7   :  { %160 = vset.pattern.permute.xlu2 %v197_v2  ;;  %34 = vperm.xlu0 %156, %v30_v3   ;;  %v202_v10 = vmov 7   ;;  %v103_v11 = vld [vmem:[#allocation2 + $0x68] sm:$0xff]  ;;  %v102_v12 = vld [vmem:[#allocation2 + $0x60] sm:$0xff]  ;;  %v101_v13 = vld [vmem:[#allocation2 + $0x58] sm:$0xff]  ;;  %v32_v29 = vand.u32 127, %v31_v26  ;;  %v203_v33 = vmov 0.0  }
   0x8   :  { %48 = vperm.xlu1 %158, %v30_v3   ;;  %62 = vperm.xlu2 %160, %v30_v3   ;;  %v100_v14 = vld [vmem:[#allocation2 + $0x50] sm:$0xff]  ;;  %v99_v15 = vld [vmem:[#allocation2 + $0x48] sm:$0xff]  ;;  %v98_v16 = vld [vmem:[#allocation2 + $0x40] sm:$0xff] }
   0x9   :  { %110 = vmatpush.msra.mxu0 %v105_v4  ;;  %v97_v17 = vld [vmem:[#allocation2 + $0x38] sm:$0xff]  ;;  %v96_v18 = vld [vmem:[#allocation2 + $0x30] sm:$0xff]  ;;  %v95_v19 = vld [vmem:[#allocation2 + $0x28] sm:$0xff] }
   0xa   :  { %v94_v20 = vld [vmem:[#allocation2 + $0x20] sm:$0xff]  ;;  %v93_v21 = vld [vmem:[#allocation2 + $0x18] sm:$0xff]  ;;  %v92_v22 = vld [vmem:[#allocation2 + $0x10] sm:$0xff] }
   0xb   :  { %111 = vmatpush.msra.mxu0 %v104_v5  ;;  %v91_v23 = vld [vmem:[#allocation2 + $0x8] sm:$0xff]  ;;  %v90_v24 = vld [vmem:[#allocation2] sm:$0xff] }
   0xc   :  { %v165_v52 = vld [vmem:[%s238_s2] ss:$0 sm:$0xff] }
   0xd   :  { %112 = vmatpush.msra.mxu0 %v103_v11 }
   0xf   :  { %157 = vset.pattern.permute.xlu0 %v198_v6  ;;  %113 = vmatpush.msra.mxu0 %v102_v12 }
  0x10   :  { %159 = vset.pattern.permute.xlu1 %v199_v7  ;;  %41 = vperm.xlu0 %157, %v30_v3  }
  0x11   :  { %55 = vperm.xlu1 %159, %v30_v3   ;;  %161 = vset.pattern.permute.xlu2 %v200_v8 }
  0x12   :  { %69 = vperm.xlu2 %161, %v30_v3   ;;  %114 = vmatpush.msra.mxu0 %v101_v13 }
  0x14   :  { %115 = vmatpush.msra.mxu0 %v100_v14 }
  0x16   :  { %116 = vmatpush.msra.mxu0 %v99_v15 }
  0x18   :  { %164 = vset.pattern.permute.xlu0 %v202_v10  ;;  %117 = vmatpush.msra.mxu0 %v98_v16 }
  0x19   :  { %162 = vset.pattern.permute.xlu1 %v201_v9 }
  0x1a   :  { %76 = vperm.xlu1 %162, %v30_v3   ;;  %163 = vset.pattern.permute.xlu2 %v202_v10 }
  0x1b   :  { %83 = vperm.xlu2 %163, %v30_v3   ;;  %118 = vmatpush.msra.mxu0 %v97_v17 }
  0x1d   :  { %119 = vmatpush.msra.mxu0 %v96_v18 }
  0x1f   :  { %120 = vmatpush.msra.mxu0 %v95_v19 }
  0x21   :  { %121 = vmatpush.msra.mxu0 %v94_v20 }
  0x23   :  { %122 = vmatpush.msra.mxu0 %v93_v21 }
  0x25   :  { %123 = vmatpush.msra.mxu0 %v92_v22 }
  0x27   :  { %124 = vmatpush.msra.mxu0 %v91_v23 }
  0x29   :  { %125 = vmatpush.msra.mxu0 %v90_v24 }
  0x62   :  { %v63_v25 = vpop.permute.xlu2 %62 }
  0x63   :  { %vm64_vm4 = vcmp.eq.s32.totalorder %v63_v25, %v32_v29 }
  0x64   :  { %v140_v42 = vsel %vm64_vm4, 1.0, %v203_v33 }
  0x6c   :  { %v70_v30 = vpop.permute.xlu2 %69 }
  0x6d   :  { %vm71_vm5 = vcmp.eq.s32.totalorder %v70_v30, %v32_v29 }
  0x6e   :  { %v141_v45 = vsel %vm71_vm5, 1.0, %v203_v33 }
  0x75   :  { %v84_v40 = vpop.permute.xlu2 %83 }
  0x76   :  { %vm85_vm6 = vcmp.eq.s32.totalorder %v84_v40, %v32_v29 }
  0x77   :  { %v143_v48 = vsel %vm85_vm6, 1.0, %v203_v33 }
  0x79   :  { %v35_v27 = vpop.permute.xlu0 %34 }
  0x7a   :  { %v49_v28 = vpop.permute.xlu1 %48  ;;  %vm36_vm0 = vcmp.eq.s32.totalorder %v35_v27, %v32_v29 }
  0x7b   :  { %vm50_vm1 = vcmp.eq.s32.totalorder %v49_v28, %v32_v29  ;;  %v136_v34 = vsel %vm36_vm0, 1.0, %v203_v33 }
  0x7c   :  { %v138_v37 = vsel %vm50_vm1, 1.0, %v203_v33 }
  0x82   :  { %v42_v31 = vpop.permute.xlu0 %41 }
  0x83   :  { %v56_v32 = vpop.permute.xlu1 %55  ;;  %vm43_vm2 = vcmp.eq.s32.totalorder %v42_v31, %v32_v29 }
  0x84   :  { %v137_v35 = vsel %vm43_vm2, 1.0, %v203_v33  ;;  %vm57_vm3 = vcmp.eq.s32.totalorder %v56_v32, %v32_v29 }
  0x85   :  { %v46_v36 = vadd.f32 %v137_v35, %v136_v34  ;;  %v139_v39 = vsel %vm57_vm3, 1.0, %v203_v33 }
  0x87   :  { %v53_v38 = vadd.f32 %v138_v37, %v46_v36 }
  0x89   :  { %v60_v41 = vadd.f32 %v139_v39, %v53_v38 }
  0x8b   :  { %v67_v43 = vadd.f32 %v140_v42, %v60_v41 }
  0x8c   :  { %v77_v44 = vpop.permute.xlu1 %76 }
  0x8d   :  { %vm78_vm7 = vcmp.eq.s32.totalorder %v77_v44, %v32_v29  ;;  %v74_v46 = vadd.f32 %v141_v45, %v67_v43 }
  0x8e   :  { %v142_v47 = vsel %vm78_vm7, 1.0, %v203_v33 }
  0x8f   :  { %v81_v49 = vadd.f32 %v142_v47, %v74_v46 }
  0x91   :  { %v88_v50 = vadd.f32 %v143_v48, %v81_v49 }
  0x93   :  { %v89_v51 = vmul.f32 0.125, %v88_v50 }
  0x95   :  { %126 = vmatmul.f32.vlgmr.msra.gmra.mxu0 %v89_v51 }
 0x112   :  { %v127_v53 = vpop.f32.mrf.mxu0 }
 0x113   :  { %v128_v54 = vadd.f32 %v165_v52, %v127_v53 }
 0x115   :  { %130 = vst [vmem:[%s239_s3] sm:$0xff] %v128_v54 }
 0x116   :  { %135 = vsyncpa [#allocation3], 1 }

</bundles_post_ra>
